<compile_context>
chip_gen: v5e
topology: v5e:2x2
jax: 0.10.0
libtpu: 0.0.40
codegen_flags: <defaults>
</compile_context>

<pallas_src>
import numpy as np
import jax
import jax.numpy as jnp
from jax import lax
from jax.experimental import pallas as pl
from jax.experimental.pallas import tpu as pltpu

_EPS = np.float32(np.finfo(np.float32).eps)   # torch.finfo(torch.float32).eps


def _round_up(x, m):
    return -(-x // m) * m


def _cdiv(a, b):
    return -(-a // b)


# ----------------------------------------------------------------------------
# Deterministic CQT kernel construction (numpy port of create_cqt_kernels with
# window='hann', gamma=0, norm=1, pad_fft=True).
# ----------------------------------------------------------------------------
def _hann_periodic(n):
    k = np.arange(n)
    return 0.5 - 0.5 * np.cos(2.0 * np.pi * k / n)


def _create_cqt_kernels(Q, fs, fmin, n_bins, bins_per_octave, norm=1):
    freqs = fmin * 2.0 ** (np.arange(n_bins, dtype=np.float64) / float(bins_per_octave))
    if np.max(freqs) > fs / 2:
        raise ValueError("The top bin has exceeded the Nyquist frequency")
    lengths = np.ceil(Q * fs / freqs)
    max_len = int(max(lengths))
    fft_len = int(2 ** np.ceil(np.log2(max_len)))
    kern = np.zeros((n_bins, fft_len), dtype=np.complex64)
    for k in range(n_bins):
        freq = freqs[k]
        l = int(lengths[k])
        if l % 2 == 1:
            start = int(np.ceil(fft_len / 2.0 - l / 2.0)) - 1
        else:
            start = int(np.ceil(fft_len / 2.0 - l / 2.0))
        window = _hann_periodic(l)
        sig = window * np.exp(np.r_[-l // 2:l // 2] * 1j * 2 * np.pi * freq / fs) / l
        if norm:
            sig = sig / np.linalg.norm(sig, norm)
        kern[k, start:start + l] = sig
    return kern, fft_len, lengths.astype(np.float32)


# ----------------------------------------------------------------------------
# Pallas kernel: in-kernel framing (slab of tm + S - 1 hop-rows assembled from two
# consecutive tm-row blocks), S shifted MXU matmuls against the resident fused weight,
# then sqrt-free log-magnitude finalize.
# ----------------------------------------------------------------------------
def _hcqt_logmag_kernel(xa_ref, xb_ref, w_ref, out_ref, acc_ref, slab_ref):
    tm = xa_ref.shape[0]          # frames per grid step
    S = w_ref.shape[0]            # hop-row blocks per frame (ceil(fftLen / hop))
    npad = out_ref.shape[-1]

    # Overlapping slab: frame r of this tile spans hop-rows [r, r + S) of the slab.
    slab_ref[:tm, :] = xa_ref[...]
    slab_ref[tm:, :] = xb_ref[...]

    acc_ref[...] = jnp.zeros_like(acc_ref)

    def accum(s):
        frames = slab_ref[pl.ds(s, tm), :]                        # (tm, hop)
        acc_ref[...] += jnp.dot(frames, w_ref[s],                 # (hop, 2*Npad)
                                preferred_element_type=jnp.float32)

    if S <= 8:                      # static -> fully unrolled
        for s in range(S):
            accum(s)
    else:
        def body(s, carry):
            accum(s)
            return carry
        lax.fori_loop(0, S, body, 0)

    acc = acc_ref[...]
    real = acc[:, :npad]
    imag = acc[:, npad:]
    mag2 = jnp.maximum(real * real + imag * imag, _EPS * _EPS)
    # 20*log10(max(|z|, eps)) == 10*log10(max(|z|^2, eps^2))
    out_ref[...] = 10.0 * jnp.log10(mag2)


class PreprocessorPallas:
    """JAX/Pallas equivalent of the PyTorch `Preprocessor` (log-magnitude HCQT)."""

    def __init__(self, hop_size, sampling_rate, harmonics=(1, 2, 3),
                 fmin=32.7, fmax=None, bins_per_semitone=1, n_bins=84,
                 center_bins=True, compute_dtype=jnp.float32):
        assert fmax is None  # TODO(synk): fmax-driven n_bins inference not needed here
        self.hop_length = int(hop_size * sampling_rate / 1000 + 0.5)
        self.compute_dtype = compute_dtype
        if center_bins:
            fmin = fmin / 2 ** ((bins_per_semitone - 1) / (24 * bins_per_semitone))
        bpo = 12 * bins_per_semitone
        Q = 1.0 / (2 ** (1.0 / bpo) - 1.0)                     # filter_scale = 1

        per_h = [_create_cqt_kernels(Q, sampling_rate, h * fmin, n_bins, bpo)
                 for h in harmonics]
        self._per_h = per_h                                    # kept for reference check
        self.max_fft = max(f for _, f, _ in per_h)             # power of two
        self.n_bins = n_bins
        self.n_harm = len(harmonics)

        hop = self.hop_length
        K = self.max_fft
        S = _cdiv(K, hop)                                      # hop-row blocks per frame
        Kp = S * hop                                           # zero-extended kernel width
        self.n_kblocks = S

        N = self.n_harm * n_bins
        Npad = int(_round_up(N, 128))                          # lane-dense output
        self.n_out = N
        self.n_out_pad = Npad

        # Fused weight (Kp, 2*Npad): [ real*sqrt(len) | 0 | imag*sqrt(len) | 0 ],
        # each harmonic center-padded to max_fft, then zero-extended to Kp rows.
        W = np.zeros((Kp, 2 * Npad), dtype=np.float32)
        for hi, (kern, fft_len, lengths) in enumerate(per_h):
            d = (K - fft_len) // 2
            scale = np.sqrt(lengths).astype(np.float32)        # librosa normalization
            col = hi * n_bins
            W[d:d + fft_len, col:col + n_bins] = kern.real.T.astype(np.float32) * scale[None, :]
            W[d:d + fft_len, Npad + col:Npad + col + n_bins] = kern.imag.T.astype(np.float32) * scale[None, :]
        # (S, hop, 2*Npad): one hop-row block per in-kernel reduction step; held VMEM-resident.
        self.W = jnp.asarray(W.reshape(S, hop, 2 * Npad), dtype=compute_dtype)

    def __call__(self, x):
        x = jnp.asarray(x, jnp.float32)
        if x.ndim == 1:
            x = x[None, :]
        elif x.ndim == 3:                                      # (B, 1, L) like broadcast_dim
            x = x[:, 0, :]
        B, L = x.shape
        hop, K, S, Npad = self.hop_length, self.max_fft, self.n_kblocks, self.n_out_pad
        pad = K // 2
        if pad > L - 1:
            raise ValueError(f"input too short for reflect padding: need L > {pad}")

        T = L // hop + 1

        # ---------------- generation-aware tiling ----------------
        try:
            info = pltpu.get_tpu_info()
            vmem_cap = int(getattr(info, "vmem_capacity_bytes", 64 * 1024 * 1024))
        except Exception:
            vmem_cap = 64 * 1024 * 1024                        # most conservative (v7x-like)
        tm_cap = 512 if vmem_cap >= 100 * 1024 * 1024 else 256  # v5e/v6e: 128 MiB, v7x: 64 MiB
        tm = min(tm_cap, int(_round_up(T, 16)))                 # multiple of 16 (bf16-friendly)
        tm = max(tm, int(_round_up(S, 16)))                     # slab (2 blocks) must cover S-1 extra rows
        if B * _cdiv(T, tm) < 2 and T >= 32:                    # keep both v7x TensorCores busy
            tm = max(int(_round_up(S, 16)), int(_round_up(_cdiv(T, 2), 16)))
        n_tiles = _cdiv(T, tm)

        itemsize = 2 if self.compute_dtype == jnp.bfloat16 else 4
        need = (2 * 2 * tm * hop * itemsize                    # A + B tiles, double-buffered
                + 2 * S * hop * 2 * Npad * itemsize            # resident W (worst-case 2 bufs)
                + 2 * tm * Npad * 4                            # out tile, double-buffered
                + tm * 2 * Npad * 4                            # acc scratch
                + 2 * tm * hop * itemsize)                     # slab scratch
        vmem_limit = int(min(max(48 * 1024 * 1024, 2 * need), int(0.9 * vmem_cap)))
        vmem_limit = max(vmem_limit, need + (4 << 20))

        # ------------- reflect pad + hop-row reshape (no im2col) -------------
        xp = jnp.pad(x, ((0, 0), (pad, pad)), mode="reflect")
        Lp = xp.shape[1]
        R_pad = (n_tiles + 1) * tm                             # +1 block: read as "next tile"
        total = R_pad * hop
        if total < Lp:
            raise ValueError("internal tiling error: padded row grid too small")
        xp = jnp.pad(xp, ((0, 0), (0, total - Lp)))            # zero tail (hits only zero W rows)
        x2 = xp.reshape(B, R_pad, hop).astype(self.compute_dtype)

        out = pl.pallas_call(
            _hcqt_logmag_kernel,
            out_shape=jax.ShapeDtypeStruct((B, n_tiles * tm, Npad), jnp.float32),
            grid_spec=pltpu.PrefetchScalarGridSpec(
                num_scalar_prefetch=0,
                grid=(B, n_tiles),
                in_specs=[
                    pl.BlockSpec((None, tm, hop), lambda b, i: (b, i, 0)),      # current tile rows
                    pl.BlockSpec((None, tm, hop), lambda b, i: (b, i + 1, 0)),  # next tile rows (overlap)
                    pl.BlockSpec((S, hop, 2 * Npad), lambda b, i: (0, 0, 0)),   # W, VMEM-resident
                ],
                out_specs=pl.BlockSpec((None, tm, Npad), lambda b, i: (b, i, 0)),
                scratch_shapes=[
                    pltpu.VMEM((tm, 2 * Npad), jnp.float32),          # f32 accumulator
                    pltpu.VMEM((2 * tm, hop), self.compute_dtype),    # overlapping slab
                ],
            ),
            compiler_params=pltpu.CompilerParams(
                dimension_semantics=("parallel", "parallel"),
                vmem_limit_bytes=vmem_limit,
            ),
        )(x2, x2, self.W)

        out = out[:, :T, :self.n_out].reshape(B, T, self.n_harm, self.n_bins)  # (B, T, H, F)
        if B == 1:                                                               # squeeze_(0)
            out = out[0]
        return out


# ----------------------------------------------------------------------------
# Pure-JAX per-harmonic reference mirroring the PyTorch CQT / ToLogMagnitude path.
# ----------------------------------------------------------------------------
def _reference_logmag_hcqt(x, pre):
    x = jnp.asarray(x, jnp.float32)
    if x.ndim == 1:
        x = x[None, :]
    B, L = x.shape
    hop = pre.hop_length
    T = L // hop + 1
    outs = []
    for (kern, fft_len, lengths) in pre._per_h:
        pad = fft_len // 2
        xp = jnp.pad(x, ((0, 0), (pad, pad)), mode="reflect")
        idx = jnp.arange(T)[:, None] * hop + jnp.arange(fft_len)[None, :]
        fr = xp[:, idx]                                              # (B, T, Kh)
        wr = jnp.asarray(np.ascontiguousarray(kern.real.T))          # (Kh, nb)
        wi = jnp.asarray(np.ascontiguousarray(kern.imag.T))
        sc = jnp.sqrt(jnp.asarray(lengths))[None, None, :]
        re = jnp.einsum("btk,kn->btn", fr, wr, precision=jax.lax.Precision.HIGHEST) * sc
        im = -jnp.einsum("btk,kn->btn", fr, wi, precision=jax.lax.Precision.HIGHEST) * sc
        mag = jnp.maximum(jnp.sqrt(re * re + im * im), _EPS)
        outs.append(20.0 * jnp.log10(mag))
    ref = jnp.stack(outs, axis=2)                                    # (B, T, H, nb)
    if B == 1:
        ref = ref[0]
    return ref


if __name__ == "__main__":
    key = jax.random.PRNGKey(0)
    # small, consistent config: sr=4000 Hz, hop_size=64 ms -> hop=256 samples,
    # fmin=200 Hz, 12 bins, harmonics (1,2,3)  (top bin 1132.6 Hz < Nyquist 2000 Hz)
    # max_fft=512 -> S=2, so the overlapping in-kernel framing path is exercised.
    B, L, sr = 2, 2048, 4000
    x = jax.random.normal(key, (B, L), dtype=jnp.float32)

    pre = PreprocessorPallas(hop_size=64.0, sampling_rate=sr,
                             harmonics=(1, 2, 3), fmin=200.0,
                             n_bins=12, bins_per_semitone=1, center_bins=True)

    y = jax.block_until_ready(pre(x))

    T = L // pre.hop_length + 1
    assert y.shape == (B, T, 3, 12), y.shape
    assert y.dtype == jnp.float32
    assert bool(jnp.all(jnp.isfinite(y)))

    # numerical parity with the per-harmonic (PyTorch-style) reference, in dB
    y_ref = jax.block_until_ready(_reference_logmag_hcqt(x, pre))
    np.testing.assert_allclose(np.asarray(y), np.asarray(y_ref), rtol=0.0, atol=0.1)

    # bf16 fast path (single-pass MXU, half the DMA bytes): run-only sanity check.
    pre_bf16 = PreprocessorPallas(hop_size=64.0, sampling_rate=sr,
                                  harmonics=(1, 2, 3), fmin=200.0,
                                  n_bins=12, bins_per_semitone=1, center_bins=True,
                                  compute_dtype=jnp.bfloat16)
    y16 = jax.block_until_ready(pre_bf16(x))
    assert y16.shape == y.shape
    assert bool(jnp.all(jnp.isfinite(y16)))

    print("KERNEL_OK")
</pallas_src>

<mosaic_0001>
module attributes {stable_mosaic.version = 11 : i64} {
  func.func @_hcqt_logmag_kernel(%arg0: i32, %arg1: i32, %arg2: memref<1x16x256xf32, #tpu.memory_space<vmem>>, %arg3: memref<1x16x256xf32, #tpu.memory_space<vmem>>, %arg4: memref<2x256x256xf32, #tpu.memory_space<vmem>>, %arg5: memref<1x16x128xf32, #tpu.memory_space<vmem>>, %arg6: memref<16x256xf32, #tpu.memory_space<vmem>>, %arg7: memref<32x256xf32, #tpu.memory_space<vmem>>) attributes {dimension_semantics = [#tpu.dimension_semantics<parallel>, #tpu.dimension_semantics<parallel>], iteration_bounds = array<i64: 2, 1>, scalar_prefetch = 0 : i64, scratch_operands = 2 : i64, tpu.core_type = #tpu.core_type<tc>, window_params = [{transform_indices = @transform_0, window_bounds = array<i64: 1, 16, 256>}, {transform_indices = @transform_1, window_bounds = array<i64: 1, 16, 256>}, {pipeline_mode = #tpu.pipeline_mode<synchronous>, transform_indices = @transform_2, window_bounds = array<i64: 2, 256, 256>}, {transform_indices = @transform_3, window_bounds = array<i64: 1, 16, 128>}]} {
    %c0 = arith.constant 0 : index
    %c0_0 = arith.constant 0 : index
    %c0_1 = arith.constant 0 : index
    %0 = vector.load %arg2[%c0, %c0_0, %c0_1] : memref<1x16x256xf32, #tpu.memory_space<vmem>>, vector<1x16x256xf32>
    %1 = vector.shape_cast %0 : vector<1x16x256xf32> to vector<16x256xf32>
    %c0_2 = arith.constant 0 : index
    %c0_3 = arith.constant 0 : index
    %2 = vector.load %arg7[%c0_2, %c0_3] : memref<32x256xf32, #tpu.memory_space<vmem>>, vector<16x256xf32>
    tpu.vector_store %arg7[%c0_2, %c0_3], %1 {strides = array<i32>} : memref<32x256xf32, #tpu.memory_space<vmem>>, vector<16x256xf32>,
    %c0_4 = arith.constant 0 : index
    %c0_5 = arith.constant 0 : index
    %c0_6 = arith.constant 0 : index
    %3 = vector.load %arg3[%c0_4, %c0_5, %c0_6] : memref<1x16x256xf32, #tpu.memory_space<vmem>>, vector<1x16x256xf32>
    %4 = vector.shape_cast %3 : vector<1x16x256xf32> to vector<16x256xf32>
    %c16 = arith.constant 16 : index
    %c0_7 = arith.constant 0 : index
    %5 = vector.load %arg7[%c16, %c0_7] : memref<32x256xf32, #tpu.memory_space<vmem>>, vector<16x256xf32>
    tpu.vector_store %arg7[%c16, %c0_7], %4 {strides = array<i32>} : memref<32x256xf32, #tpu.memory_space<vmem>>, vector<16x256xf32>,
    %cst = arith.constant 0.000000e+00 : f32
    %6 = vector.broadcast %cst : f32 to vector<16x256xf32>
    %c0_8 = arith.constant 0 : index
    %c0_9 = arith.constant 0 : index
    %7 = vector.load %arg6[%c0_8, %c0_9] : memref<16x256xf32, #tpu.memory_space<vmem>>, vector<16x256xf32>
    tpu.vector_store %arg6[%c0_8, %c0_9], %6 {strides = array<i32>} : memref<16x256xf32, #tpu.memory_space<vmem>>, vector<16x256xf32>,
    %c0_10 = arith.constant 0 : index
    %c0_11 = arith.constant 0 : index
    %8 = vector.load %arg7[%c0_10, %c0_11] : memref<32x256xf32, #tpu.memory_space<vmem>>, vector<16x256xf32>
    %c0_12 = arith.constant 0 : index
    %c0_13 = arith.constant 0 : index
    %9 = vector.load %arg6[%c0_12, %c0_13] : memref<16x256xf32, #tpu.memory_space<vmem>>, vector<16x256xf32>
    %c0_14 = arith.constant 0 : index
    %c0_15 = arith.constant 0 : index
    %c0_16 = arith.constant 0 : index
    %10 = vector.load %arg4[%c0_14, %c0_15, %c0_16] : memref<2x256x256xf32, #tpu.memory_space<vmem>>, vector<1x256x256xf32>
    %11 = vector.shape_cast %10 : vector<1x256x256xf32> to vector<256x256xf32>
    %cst_17 = arith.constant dense<0.000000e+00> : vector<16x256xf32>
    %12 = tpu.matmul %8, %11, %cst_17 {dimension_numbers = #tpu.dot_dimension_numbers<[1], [0], [0], [1], [0, 0, 1, 1], [], []>} : vector<16x256xf32>, vector<256x256xf32>, vector<16x256xf32> -> vector<16x256xf32>
    %13 = arith.addf %9, %12 : vector<16x256xf32>
    %c0_18 = arith.constant 0 : index
    %c0_19 = arith.constant 0 : index
    %14 = vector.load %arg6[%c0_18, %c0_19] : memref<16x256xf32, #tpu.memory_space<vmem>>, vector<16x256xf32>
    tpu.vector_store %arg6[%c0_18, %c0_19], %13 {strides = array<i32>} : memref<16x256xf32, #tpu.memory_space<vmem>>, vector<16x256xf32>,
    %c1 = arith.constant 1 : index
    %c0_20 = arith.constant 0 : index
    %15 = vector.load %arg7[%c1, %c0_20] : memref<32x256xf32, #tpu.memory_space<vmem>>, vector<16x256xf32>
    %c0_21 = arith.constant 0 : index
    %c0_22 = arith.constant 0 : index
    %16 = vector.load %arg6[%c0_21, %c0_22] : memref<16x256xf32, #tpu.memory_space<vmem>>, vector<16x256xf32>
    %c1_23 = arith.constant 1 : index
    %c0_24 = arith.constant 0 : index
    %c0_25 = arith.constant 0 : index
    %17 = vector.load %arg4[%c1_23, %c0_24, %c0_25] : memref<2x256x256xf32, #tpu.memory_space<vmem>>, vector<1x256x256xf32>
    %18 = vector.shape_cast %17 : vector<1x256x256xf32> to vector<256x256xf32>
    %cst_26 = arith.constant dense<0.000000e+00> : vector<16x256xf32>
    %19 = tpu.matmul %15, %18, %cst_26 {dimension_numbers = #tpu.dot_dimension_numbers<[1], [0], [0], [1], [0, 0, 1, 1], [], []>} : vector<16x256xf32>, vector<256x256xf32>, vector<16x256xf32> -> vector<16x256xf32>
    %20 = arith.addf %16, %19 : vector<16x256xf32>
    %c0_27 = arith.constant 0 : index
    %c0_28 = arith.constant 0 : index
    %21 = vector.load %arg6[%c0_27, %c0_28] : memref<16x256xf32, #tpu.memory_space<vmem>>, vector<16x256xf32>
    tpu.vector_store %arg6[%c0_27, %c0_28], %20 {strides = array<i32>} : memref<16x256xf32, #tpu.memory_space<vmem>>, vector<16x256xf32>,
    %c0_29 = arith.constant 0 : index
    %c0_30 = arith.constant 0 : index
    %22 = vector.load %arg6[%c0_29, %c0_30] : memref<16x256xf32, #tpu.memory_space<vmem>>, vector<16x256xf32>
    %23 = vector.extract_strided_slice %22 {offsets = [0, 0], sizes = [16, 128], strides = [1, 1]} : vector<16x256xf32> to vector<16x128xf32>
    %24 = vector.extract_strided_slice %22 {offsets = [0, 128], sizes = [16, 128], strides = [1, 1]} : vector<16x256xf32> to vector<16x128xf32>
    %25 = arith.mulf %23, %23 : vector<16x128xf32>
    %26 = arith.mulf %24, %24 : vector<16x128xf32>
    %27 = arith.addf %25, %26 : vector<16x128xf32>
    %cst_31 = arith.constant 1.42108547E-14 : f32
    %28 = vector.broadcast %cst_31 : f32 to vector<16x128xf32>
    %29 = arith.maximumf %27, %28 : vector<16x128xf32>
    %30 = math.log %29 : vector<16x128xf32>
    %cst_32 = arith.constant 0.434294492 : f32
    %31 = vector.broadcast %cst_32 : f32 to vector<16x128xf32>
    %32 = arith.mulf %30, %31 : vector<16x128xf32>
    %cst_33 = arith.constant 1.000000e+01 : f32
    %33 = vector.broadcast %cst_33 : f32 to vector<16x128xf32>
    %34 = arith.mulf %33, %32 : vector<16x128xf32>
    %c0_34 = arith.constant 0 : index
    %c0_35 = arith.constant 0 : index
    %c0_36 = arith.constant 0 : index
    %35 = vector.load %arg5[%c0_34, %c0_35, %c0_36] : memref<1x16x128xf32, #tpu.memory_space<vmem>>, vector<1x16x128xf32>
    %36 = vector.shape_cast %35 : vector<1x16x128xf32> to vector<16x128xf32>
    %37 = vector.shape_cast %34 : vector<16x128xf32> to vector<1x16x128xf32>
    tpu.vector_store %arg5[%c0_34, %c0_35, %c0_36], %37 {strides = array<i32>} : memref<1x16x128xf32, #tpu.memory_space<vmem>>, vector<1x16x128xf32>,
    return
  }
  func.func @transform_0(%arg0: i32, %arg1: i32) -> (i32, i32, i32) {
    %c0_i32 = arith.constant 0 : i32
    %c0_i32_0 = arith.constant 0 : i32
    return %arg0, %arg1, %c0_i32 : i32, i32, i32
  }
  func.func @transform_1(%arg0: i32, %arg1: i32) -> (i32, i32, i32) {
    %c1_i32 = arith.constant 1 : i32
    %0 = arith.addi %arg1, %c1_i32 : i32
    %c0_i32 = arith.constant 0 : i32
    %c0_i32_0 = arith.constant 0 : i32
    return %arg0, %0, %c0_i32 : i32, i32, i32
  }
  func.func @transform_2(%arg0: i32, %arg1: i32) -> (i32, i32, i32) {
    %c0_i32 = arith.constant 0 : i32
    %c0_i32_0 = arith.constant 0 : i32
    %c0_i32_1 = arith.constant 0 : i32
    %c0_i32_2 = arith.constant 0 : i32
    return %c0_i32, %c0_i32_0, %c0_i32_1 : i32, i32, i32
  }
  func.func @transform_3(%arg0: i32, %arg1: i32) -> (i32, i32, i32) {
    %c0_i32 = arith.constant 0 : i32
    %c0_i32_0 = arith.constant 0 : i32
    return %arg0, %arg1, %c0_i32 : i32, i32, i32
  }
}

</mosaic_0001>

<bundles_post_ra>
// kernel: tpu_custom_call.1
= control target key start
LH: loop header
LB: loop body
LE: loop exit
PB: predicated region body
PF: predicated region fallthrough
CT: control target
= control target key end

     0   :  { %s1346_s0 = inlined_call_operand.hbm [shape: f32[2,32,256], index: 0, kind: input, shape index: {}]   ;;  %s1347_s1 = inlined_call_operand.hbm [shape: f32[2,32,256], index: 1, kind: input, shape index: {}]   ;;  %s1348_s2 = inlined_call_operand.hbm [shape: f32[2,256,256], index: 2, kind: input, shape index: {}]   ;;  %s1349_s3 = inlined_call_operand.hbm [shape: f32[2,16,128], index: 3, kind: output, shape index: {}]  }
   0x1   :  { %1356 = sst [smem:[#allocation17_spill]] %s1346_s0 }
   0x2   :  { %1357 = sst [smem:[#allocation18_spill]] %s1348_s2 }
   0x3   :  { %8 = vsyncpa [#allocation5], 0 }
   0x4   :  { %10 = vsyncpa [#allocation5 + $0x1], 0 }
   0x5   :  { %11 = vsyncpa [#allocation8], 0 }
   0x6   :  { %13 = vsyncpa [#allocation8 + $0x1], 0 }
   0x7   :  { %14 = vsyncpa [#allocation6], 0 }
   0x8   :  { %16 = vsyncpa [#allocation6 + $0x1], 0  ;;  %s1148_s12 = smov 0   ;;  %s1150_s13 = smov 0  }
   0x9   :  { %s1152_s14 = smov 0   ;;  %s1154_s15 = smov 0  }
   0xa   :  { %s1156_s16 = smov 0   ;;  %s1158_s17 = smov 0  }
   0xb LB: > { %1358 = sst [smem:[#allocation15_spill]] %s1117_s16  ;;  %s1179_s18 = sadd.s32 4294967295, %s1121_s17   ;;  %s1121_s17 = sphi %s1158_s17, %s22_s17   ;;  %s1117_s16 = sphi %s1156_s16, %s1370_s16   ;;  %s1113_s15 = sphi %s1154_s15, %s1369_s15   ;;  %s1109_s14 = sphi %s1152_s14, %s1373_s14   ;;  %s1105_s13 = sphi %s1150_s13, %s1372_s13   ;;  %s1101_s12 = sphi %s1148_s12, %s1371_s12  }
   0xc   : > { %s832_s19 = sadd.s32 4294967294, %s1121_s17   ;;  %p56_p0 = scmp.ne.s32.totalorder %s1105_s13, %s1101_s12 }
   0xd   : > { %p57_p1 = scmp.eq.s32.totalorder %s1179_s18, 0  ;;  %p133_p2 = scmp.eq.s32.totalorder %s1179_s18, 1 }
   0xe   : > { %p139_p3 = scmp.eq.s32.totalorder %s832_s19, 1  ;;  %p833_p5 = scmp.ge.s32.totalorder %s1121_s17, 1 }
   0xf   : > { %p1188_p4 = por %p57_p1, %p56_p0  ;;  %p146_p7 = scmp.lt.s32.totalorder %s1121_s17, 3 }
  0x10   : > { %p1193_p6 = por %p139_p3, %p56_p0  ;;  %s1361_s2 = sld [smem:[#allocation18_spill]] }
  0x11   : > { %p1201_p8 = pnand %p833_p5, %p146_p7  ;;  %s1123_s26 = smov [#allocation9]  }
  0x12   : > { %s159_s27 = sshll.u32 %s1123_s26, 4  ;;  %p835_p11 = scmp.ge.s32.totalorder %s1121_s17, 2  ;;  %s160_s27 = int_to_ptr.vmem [resolvable:$true] %s159_s27 }
  0x13   : > { %p865_p9 = pneg %p1201_p8  ;;  %s1350_s28 = smov 256  }
  0x14   : > { %s1352_s29 = smov 16   ;;  %s34_s30 = sadd.s32 1, %s1117_s16 }
  0x15   : > { %p866_p10 = pnand %p865_p9, %p57_p1  ;;  %p36_p12 = scmp.ge.s32.totalorder %s34_s30, 2 }
  0x16   : > { %s157_s24 = sshll.u32 %s1361_s2, 4  ;;  %s43_s4 = sadd.s32 1, %s1109_s14  ;;  %s158_s24 = int_to_ptr.hbm [resolvable:$true] %s157_s24 }
  0x17   : > { %868 = dma.hbm_to_vmem [thread:$0]  (!%p866_p10), %s158_s24, 16384, %s160_s27, [#allocation8], %s1350_s28, %s1350_s28, %s1352_s29  }
  0x18   : > { %p50_p13 = scmp.ne.s32.totalorder %s1109_s14, %s1105_s13  ;;  %p51_p0 = scmp.eq.s32.totalorder %s1121_s17, 0 }
  0x19   : > { %s1375_s30 = smov (%p36_p12, %s34_s30), 0  ;;  %p881_p7 = scmp.lt.s32.totalorder %s1121_s17, 2 }
  0x1a   : > { %1363 = sst [smem:[#allocation16_spill]] %s1375_s30  ;;  %p1220_p3 = por %p51_p0, %p50_p13 }
  0x1b   : > { %p1226_p5 = por %p133_p2, %p50_p13  ;;  %s38_s7 = ssub.s32 %s1117_s16, %s1375_s30 }
  0x1c   : > { %p41_p9 = scmp.eq.s32.totalorder %s38_s7, 0  ;;  %s173_s8 = sand.u32 1, %s1109_s14  }
  0x1d   : > { %s836_s9 = sshll.u32 %s173_s8, 5  ;;  %s852_s11 = sshll.u32 %s1117_s16, 6 }
  0x1e   : > { %s1235_s10 = scalar_select %p41_p9, %s1109_s14, %s43_s4  }
  0x1f   : > { %s1366_s0 = sld [smem:[#allocation17_spill]]  ;;  %s177_s24 = scalar_lea.vmem [#allocation4], %s836_s9 }
  0x20   : > { %s188_s26 = sshll.u32 %s177_s24, 4  ;;  %p870_p2 = pnand %p881_p7, %p1220_p3  ;;  %s189_s26 = int_to_ptr.vmem [resolvable:$true] %s188_s26 }
  0x21   : > { %s753_s7 = scalar_lea.hbm %s1347_s1, %s852_s11  ;;  %s174_s4 = scalar_lea.sflag [#allocation5], %s173_s8 }
  0x22   : > { %s754_s2 = scalar_lea.hbm %s753_s7, 32  ;;  %s1367_s30 = smov 16  }
  0x23   : > { %s1368_s16 = smov 256   ;;  %s212_s19 = sshll.u32 %s754_s2, 4  ;;  %s213_s19 = int_to_ptr.hbm [resolvable:$true] %s212_s19 }
  0x24   : > { %s202_s22 = scalar_lea.vmem [#allocation7], %s836_s9  ;;  %s198_s24 = sand.u32 1, %s1121_s17  }
  0x25   : > { %s185_s23 = scalar_lea.hbm %s1366_s0, %s852_s11  ;;  %s214_s0 = sshll.u32 %s202_s22, 4  ;;  %s215_s0 = int_to_ptr.vmem [resolvable:$true] %s214_s0 }
  0x26   : > { %s186_s27 = sshll.u32 %s185_s23, 4  ;;  %s199_s23 = scalar_lea.sflag [#allocation8], %s198_s24  ;;  %s187_s27 = int_to_ptr.hbm [resolvable:$true] %s186_s27 }
  0x27   : > { %872 = dma.hbm_to_vmem [thread:$0]  (!%p870_p2), %s187_s27, 512, %s189_s26, %s174_s4, %s1368_s16, %s1368_s16, %s1367_s30  }
  0x28   : > { %875 = dma.hbm_to_vmem [thread:$0]  (!%p870_p2), %s213_s19, 512, %s215_s0, %s199_s23, %s1368_s16, %s1368_s16, %s1367_s30  }
  0x29   : > { %226 = sbr.rel (%p1201_p8) target bundleno = 289 (0x121), region = 32  ;;  %s1256_s28 = sand.u32 (!%p1201_p8), 1, %s1105_s13  }
  0x2a   : > { %s843_s2 = sshll.u32 (!%p1201_p8), %s1256_s28, 5  ;;  %s229_s29 = scalar_lea.sflag (!%p1201_p8), [#allocation5], %s1256_s28 }
  0x2b   : > { %s1260_s5 = scalar_lea.vmem (!%p1201_p8), [#allocation4], %s843_s2 }
  0x2e   : > { %1084 = dma.done.wait (%p1188_p4), %s229_s29, 512  }
  0x2f   : > { %1086 = vsyncadd (%p1188_p4), %s229_s29, 4294966784  ;;  %s238_s0 = sand.u32 1, %s1179_s18   ;;  %s1267_s25 = scalar_lea.vmem [#allocation7], %s843_s2 }
  0x30   : > { %s239_s16 = scalar_lea.sflag [#allocation8], %s238_s0 }
  0x31   : > { %1088 = dma.done.wait (%p1188_p4), %s239_s16, 512  }
  0x32   : > { %1090 = vsyncadd (%p1188_p4), %s239_s16, 4294966784 }
  0x33   : > { %1092 = dma.done.wait (%p57_p1), [#allocation8], 16384  }
  0x34   : > { %1094 = vsyncadd (%p57_p1), [#allocation8], 4294950912  ;;  %v338_v0 = vld [vmem:[#allocation9 + $0xf0] sm:$0xff]  ;;  %v339_v2 = vld [vmem:[#allocation9 + $0xf8] sm:$0xff]  ;;  %vm553_vm0 = vcmask 1046528   ;;  %s846_s18 = sshll.u32 %s1256_s28, 4 }
  0x35   : > { %372 = vmatpush.msra.mxu0 %v338_v0  ;;  %v370_v1 = vld [vmem:[#allocation9 + $0x1f0] sm:$0xff]  ;;  %v371_v3 = vld [vmem:[#allocation9 + $0x1f8] sm:$0xff]  ;;  %418 = vmatpush.msra.mxu2 %v339_v2  ;;  %v336_v4 = vld [vmem:[#allocation9 + $0xe0] sm:$0xff]  ;;  %s854_s20 = sshll.u32 %s1113_s15, 4  ;;  %s275_s11 = scalar_lea.vmem [#allocation10], %s846_s18 }
  0x36   : > { %395 = vmatpush.msra.mxu1 %v370_v1  ;;  %v368_v5 = vld [vmem:[#allocation9 + $0x1e0] sm:$0xff]  ;;  %v337_v6 = vld [vmem:[#allocation9 + $0xe8] sm:$0xff]  ;;  %441 = vmatpush.msra.mxu3 %v371_v3  ;;  %v334_v8 = vld [vmem:[#allocation9 + $0xd0] sm:$0xff]  ;;  %s704_s9 = scalar_lea.hbm %s1349_s3, %s854_s20  ;;  %s705_s26 = sshll.u32 %s275_s11, 4  ;;  %s706_s26 = int_to_ptr.vmem [resolvable:$true] %s705_s26 }
  0x37   : > { %373 = vmatpush.msra.mxu0 %v336_v4  ;;  %v369_v7 = vld [vmem:[#allocation9 + $0x1e8] sm:$0xff]  ;;  %v366_v9 = vld [vmem:[#allocation9 + $0x1d0] sm:$0xff]  ;;  %419 = vmatpush.msra.mxu2 %v337_v6  ;;  %v335_v10 = vld [vmem:[#allocation9 + $0xd8] sm:$0xff]  ;;  %s707_s27 = sshll.u32 %s704_s9, 4  ;;  %s691_s7 = scalar_lea.sflag [#allocation6], %s1256_s28  ;;  %s708_s27 = int_to_ptr.hbm [resolvable:$true] %s707_s27 }
  0x38   : > { %396 = vmatpush.msra.mxu1 %v368_v5  ;;  %v367_v11 = vld [vmem:[#allocation9 + $0x1d8] sm:$0xff]  ;;  %v332_v12 = vld [vmem:[#allocation9 + $0xc0] sm:$0xff]  ;;  %442 = vmatpush.msra.mxu3 %v369_v7  ;;  %v333_v14 = vld [vmem:[#allocation9 + $0xc8] sm:$0xff]  ;;  %s1045_s4 = sshra.s32 %s708_s27, 4  ;;  %s1051_s24 = scalar_lea.hbm %s1349_s3, 32  ;;  %s1046_s4 = int_to_ptr.hbm [resolvable:$true] %s1045_s4 }
  0x39   : > { %374 = vmatpush.msra.mxu0 %v334_v8  ;;  %v364_v13 = vld [vmem:[#allocation9 + $0x1c0] sm:$0xff]  ;;  %420 = vmatpush.msra.mxu2 %v335_v10  ;;  %v365_v15 = vld [vmem:[#allocation9 + $0x1c8] sm:$0xff]  ;;  %v330_v16 = vld [vmem:[#allocation9 + $0xb0] sm:$0xff]  ;;  %s1047_s15 = scalar_lea.hbm %s1046_s4, 16  ;;  %p1052_p10 = scmp.lt.s32.totalorder %s1046_s4, %s1349_s3 }
  0x3a   : > { %397 = vmatpush.msra.mxu1 %v366_v9  ;;  %443 = vmatpush.msra.mxu3 %v367_v11  ;;  %v362_v17 = vld [vmem:[#allocation9 + $0x1b0] sm:$0xff]  ;;  %v331_v18 = vld [vmem:[#allocation9 + $0xb8] sm:$0xff]  ;;  %v328_v20 = vld [vmem:[#allocation9 + $0xa0] sm:$0xff]  ;;  %p1048_p1 = scmp.ne.s32.totalorder %s1046_s4, %s1047_s15  ;;  %p1053_p12 = scmp.lt.s32.totalorder %s1051_s24, %s1047_s15 }
  0x3b   : > { %375 = vmatpush.msra.mxu0 %v332_v12  ;;  %421 = vmatpush.msra.mxu2 %v333_v14  ;;  %v363_v19 = vld [vmem:[#allocation9 + $0x1b8] sm:$0xff]  ;;  %v360_v21 = vld [vmem:[#allocation9 + $0x1a0] sm:$0xff]  ;;  %v329_v22 = vld [vmem:[#allocation9 + $0xa8] sm:$0xff] }
  0x3c   : > { %398 = vmatpush.msra.mxu1 %v364_v13  ;;  %444 = vmatpush.msra.mxu3 %v365_v15  ;;  %v361_v23 = vld [vmem:[#allocation9 + $0x1a8] sm:$0xff]  ;;  %v326_v24 = vld [vmem:[#allocation9 + $0x90] sm:$0xff]  ;;  %v327_v26 = vld [vmem:[#allocation9 + $0x98] sm:$0xff]  ;;  %p1049_p4 = pnand %p1048_p1, %p1226_p5  ;;  %p1054_p13 = por %p1053_p12, %p1052_p10 }
  0x3d   : > { %376 = vmatpush.msra.mxu0 %v330_v16  ;;  %422 = vmatpush.msra.mxu2 %v331_v18  ;;  %v358_v25 = vld [vmem:[#allocation9 + $0x190] sm:$0xff]  ;;  %v359_v27 = vld [vmem:[#allocation9 + $0x198] sm:$0xff]  ;;  %v324_v28 = vld [vmem:[#allocation9 + $0x80] sm:$0xff] }
  0x3e   : > { %399 = vmatpush.msra.mxu1 %v362_v17  ;;  %445 = vmatpush.msra.mxu3 %v363_v19  ;;  %v356_v29 = vld [vmem:[#allocation9 + $0x180] sm:$0xff]  ;;  %v325_v30 = vld [vmem:[#allocation9 + $0x88] sm:$0xff]  ;;  %v322_v32 = vld [vmem:[#allocation9 + $0x70] sm:$0xff]  ;;  %p1050_p8 = pneg %p1049_p4 }
  0x3f   : > { %377 = vmatpush.msra.mxu0 %v328_v20  ;;  %423 = vmatpush.msra.mxu2 %v329_v22  ;;  %v357_v31 = vld [vmem:[#allocation9 + $0x188] sm:$0xff]  ;;  %v354_v33 = vld [vmem:[#allocation9 + $0x170] sm:$0xff]  ;;  %v323_v34 = vld [vmem:[#allocation9 + $0x78] sm:$0xff] }
  0x40   : > { %400 = vmatpush.msra.mxu1 %v360_v21  ;;  %446 = vmatpush.msra.mxu3 %v361_v23  ;;  %v355_v35 = vld [vmem:[#allocation9 + $0x178] sm:$0xff]  ;;  %v320_v36 = vld [vmem:[#allocation9 + $0x60] sm:$0xff]  ;;  %v321_v38 = vld [vmem:[#allocation9 + $0x68] sm:$0xff]  ;;  %p1055_p0 = pnand %p1054_p13, %p1050_p8 }
  0x41   : > { %378 = vmatpush.msra.mxu0 %v326_v24  ;;  %424 = vmatpush.msra.mxu2 %v327_v26  ;;  %v352_v37 = vld [vmem:[#allocation9 + $0x160] sm:$0xff]  ;;  %v353_v39 = vld [vmem:[#allocation9 + $0x168] sm:$0xff]  ;;  %v318_v40 = vld [vmem:[#allocation9 + $0x50] sm:$0xff] }
  0x42   : > { %401 = vmatpush.msra.mxu1 %v358_v25  ;;  %447 = vmatpush.msra.mxu3 %v359_v27  ;;  %v350_v41 = vld [vmem:[#allocation9 + $0x150] sm:$0xff]  ;;  %v319_v42 = vld [vmem:[#allocation9 + $0x58] sm:$0xff]  ;;  %v316_v44 = vld [vmem:[#allocation9 + $0x40] sm:$0xff] }
  0x43   : > { %379 = vmatpush.msra.mxu0 %v324_v28  ;;  %425 = vmatpush.msra.mxu2 %v325_v30  ;;  %v351_v43 = vld [vmem:[#allocation9 + $0x158] sm:$0xff]  ;;  %v348_v45 = vld [vmem:[#allocation9 + $0x140] sm:$0xff]  ;;  %v317_v46 = vld [vmem:[#allocation9 + $0x48] sm:$0xff] }
  0x44   : > { %402 = vmatpush.msra.mxu1 %v356_v29  ;;  %448 = vmatpush.msra.mxu3 %v357_v31  ;;  %v349_v47 = vld [vmem:[#allocation9 + $0x148] sm:$0xff]  ;;  %v314_v48 = vld [vmem:[#allocation9 + $0x30] sm:$0xff]  ;;  %v315_v50 = vld [vmem:[#allocation9 + $0x38] sm:$0xff] }
  0x45   : > { %380 = vmatpush.msra.mxu0 %v322_v32  ;;  %426 = vmatpush.msra.mxu2 %v323_v34  ;;  %v346_v49 = vld [vmem:[#allocation9 + $0x130] sm:$0xff]  ;;  %v347_v51 = vld [vmem:[#allocation9 + $0x138] sm:$0xff]  ;;  %v312_v52 = vld [vmem:[#allocation9 + $0x20] sm:$0xff] }
  0x46   : > { %403 = vmatpush.msra.mxu1 %v354_v33  ;;  %449 = vmatpush.msra.mxu3 %v355_v35  ;;  %v344_v53 = vld [vmem:[#allocation9 + $0x120] sm:$0xff]  ;;  %v313_v54 = vld [vmem:[#allocation9 + $0x28] sm:$0xff]  ;;  %v310_v56 = vld [vmem:[#allocation9 + $0x10] sm:$0xff] }
  0x47   : > { %381 = vmatpush.msra.mxu0 %v320_v36  ;;  %427 = vmatpush.msra.mxu2 %v321_v38  ;;  %v345_v55 = vld [vmem:[#allocation9 + $0x128] sm:$0xff]  ;;  %v342_v57 = vld [vmem:[#allocation9 + $0x110] sm:$0xff]  ;;  %v311_v58 = vld [vmem:[#allocation9 + $0x18] sm:$0xff] }
  0x48   : > { %404 = vmatpush.msra.mxu1 %v352_v37  ;;  %450 = vmatpush.msra.mxu3 %v353_v39  ;;  %v343_v59 = vld [vmem:[#allocation9 + $0x118] sm:$0xff]  ;;  %v308_v60 = vld [vmem:[#allocation9] sm:$0xff]  ;;  %v309_v62 = vld [vmem:[#allocation9 + $0x8] sm:$0xff] }
  0x49   : > { %382 = vmatpush.msra.mxu0 %v318_v40  ;;  %428 = vmatpush.msra.mxu2 %v319_v42  ;;  %v340_v61 = vld [vmem:[#allocation9 + $0x100] sm:$0xff]  ;;  %v341_v63 = vld [vmem:[#allocation9 + $0x108] sm:$0xff]  ;;  %v513_v0 = vld [vmem:[#allocation9 + $0x2f0] sm:$0xff] }
  0x4a   : > { %405 = vmatpush.msra.mxu1 %v350_v41  ;;  %451 = vmatpush.msra.mxu3 %v351_v43  ;;  %v545_v1 = vld [vmem:[#allocation9 + $0x3f0] sm:$0xff]  ;;  %v514_v2 = vld [vmem:[#allocation9 + $0x2f8] sm:$0xff]  ;;  %v511_v4 = vld [vmem:[#allocation9 + $0x2e0] sm:$0xff] }
  0x4b   : > { %383 = vmatpush.msra.mxu0 %v316_v44  ;;  %429 = vmatpush.msra.mxu2 %v317_v46  ;;  %v546_v3 = vld [vmem:[#allocation9 + $0x3f8] sm:$0xff]  ;;  %v1278_v5 = vld [vmem:[%s1260_s5] sm:$0xff]  ;;  %v512_v7 = vld [vmem:[#allocation9 + $0x2e8] sm:$0xff] }
  0x4c   : > { %406 = vmatpush.msra.mxu1 %v348_v45  ;;  %452 = vmatpush.msra.mxu3 %v349_v47  ;;  %v543_v6 = vld [vmem:[#allocation9 + $0x3e0] sm:$0xff]  ;;  %284 = vst [vmem:[#allocation3 + $0x30] sm:$0xff] %v1278_v5  ;;  %v1282_v8 = vld [vmem:[%s1260_s5 + $0x8] sm:$0xff]  ;;  %v509_v10 = vld [vmem:[#allocation9 + $0x2d0] sm:$0xff] }
  0x4d   : > { %384 = vmatpush.msra.mxu0 %v314_v48  ;;  %430 = vmatpush.msra.mxu2 %v315_v50  ;;  %v544_v9 = vld [vmem:[#allocation9 + $0x3e8] sm:$0xff]  ;;  %285 = vst [vmem:[#allocation3] sm:$0xff] %v1282_v8  ;;  %v541_v11 = vld [vmem:[#allocation9 + $0x3d0] sm:$0xff]  ;;  %v510_v12 = vld [vmem:[#allocation9 + $0x2d8] sm:$0xff] }
  0x4e   : > { %407 = vmatpush.msra.mxu1 %v346_v49  ;;  %453 = vmatpush.msra.mxu3 %v347_v51  ;;  %v542_v13 = vld [vmem:[#allocation9 + $0x3d8] sm:$0xff]  ;;  %v507_v14 = vld [vmem:[#allocation9 + $0x2c0] sm:$0xff]  ;;  %v508_v16 = vld [vmem:[#allocation9 + $0x2c8] sm:$0xff] }
  0x4f   : > { %385 = vmatpush.msra.mxu0 %v312_v52  ;;  %431 = vmatpush.msra.mxu2 %v313_v54  ;;  %v539_v15 = vld [vmem:[#allocation9 + $0x3c0] sm:$0xff]  ;;  %v540_v17 = vld [vmem:[#allocation9 + $0x3c8] sm:$0xff]  ;;  %v505_v18 = vld [vmem:[#allocation9 + $0x2b0] sm:$0xff] }
  0x50   : > { %408 = vmatpush.msra.mxu1 %v344_v53  ;;  %454 = vmatpush.msra.mxu3 %v345_v55  ;;  %v1286_v19 = vld [vmem:[%s1260_s5 + $0x10] sm:$0xff]  ;;  %v506_v21 = vld [vmem:[#allocation9 + $0x2b8] sm:$0xff]  ;;  %v503_v24 = vld [vmem:[#allocation9 + $0x2a0] sm:$0xff] }
  0x51   : > { %386 = vmatpush.msra.mxu0 %v310_v56  ;;  %432 = vmatpush.msra.mxu2 %v311_v58  ;;  %v537_v20 = vld [vmem:[#allocation9 + $0x3b0] sm:$0xff]  ;;  %v1289_v22 = vld [vmem:[%s1260_s5 + $0x18] sm:$0xff]  ;;  %v535_v25 = vld [vmem:[#allocation9 + $0x3a0] sm:$0xff] }
  0x52   : > { %409 = vmatpush.msra.mxu1 %v342_v57  ;;  %455 = vmatpush.msra.mxu3 %v343_v59  ;;  %v538_v23 = vld [vmem:[#allocation9 + $0x3b8] sm:$0xff]  ;;  %v504_v26 = vld [vmem:[#allocation9 + $0x2a8] sm:$0xff]  ;;  %v501_v28 = vld [vmem:[#allocation9 + $0x290] sm:$0xff] }
  0x53   : > { %387 = vmatpush.msra.mxu0 %v308_v60  ;;  %433 = vmatpush.msra.mxu2 %v309_v62  ;;  %v536_v27 = vld [vmem:[#allocation9 + $0x3a8] sm:$0xff]  ;;  %v533_v29 = vld [vmem:[#allocation9 + $0x390] sm:$0xff]  ;;  %v502_v30 = vld [vmem:[#allocation9 + $0x298] sm:$0xff] }
  0x54   : > { %410 = vmatpush.msra.mxu1 %v340_v61  ;;  %456 = vmatpush.msra.mxu3 %v341_v63  ;;  %v534_v31 = vld [vmem:[#allocation9 + $0x398] sm:$0xff]  ;;  %v499_v32 = vld [vmem:[#allocation9 + $0x280] sm:$0xff]  ;;  %v500_v34 = vld [vmem:[#allocation9 + $0x288] sm:$0xff] }
  0x55   : > { %568 = vmatpush.msrb.mxu0 %v513_v0  ;;  %614 = vmatpush.msrb.mxu2 %v514_v2  ;;  %v531_v33 = vld [vmem:[#allocation9 + $0x380] sm:$0xff]  ;;  %v289_v36 = vld [vmem:[%s1267_s25 + $0x8] sm:$0xff]  ;;  %v497_v38 = vld [vmem:[#allocation9 + $0x270] sm:$0xff]  ;;  %v555_v2 = vrot.slane %v1286_v19, 1 }
  0x56   : > { %591 = vmatpush.msrb.mxu1 %v545_v1  ;;  %637 = vmatpush.msrb.mxu3 %v546_v3  ;;  %v288_v35 = vld [vmem:[%s1267_s25] sm:$0xff]  ;;  %v532_v37 = vld [vmem:[#allocation9 + $0x388] sm:$0xff]  ;;  %293 = vst [vmem:[#allocation3 + $0x20] sm:$0xff] %v289_v36  ;;  %v529_v39 = vld [vmem:[#allocation9 + $0x370] sm:$0xff] }
  0x57   : > { %569 = vmatpush.msrb.mxu0 %v511_v4  ;;  %615 = vmatpush.msrb.mxu2 %v512_v7  ;;  %292 = vst [vmem:[#allocation3 + $0x8] sm:$0xff] %v288_v35  ;;  %v498_v40 = vld [vmem:[#allocation9 + $0x278] sm:$0xff]  ;;  %v495_v42 = vld [vmem:[#allocation9 + $0x260] sm:$0xff]  ;;  %v496_v44 = vld [vmem:[#allocation9 + $0x268] sm:$0xff] }
  0x58   : > { %592 = vmatpush.msrb.mxu1 %v543_v6  ;;  %638 = vmatpush.msrb.mxu3 %v544_v9  ;;  %v530_v41 = vld [vmem:[#allocation9 + $0x378] sm:$0xff]  ;;  %v527_v43 = vld [vmem:[#allocation9 + $0x360] sm:$0xff]  ;;  %v528_v45 = vld [vmem:[#allocation9 + $0x368] sm:$0xff]  ;;  %v558_v6 = vrot.slane %v1289_v22, 1 }
  0x59   : > { %570 = vmatpush.msrb.mxu0 %v509_v10  ;;  %616 = vmatpush.msrb.mxu2 %v510_v12  ;;  %v493_v46 = vld [vmem:[#allocation9 + $0x250] sm:$0xff]  ;;  %v494_v48 = vld [vmem:[#allocation9 + $0x258] sm:$0xff]  ;;  %v491_v50 = vld [vmem:[#allocation9 + $0x240] sm:$0xff] }
  0x5a   : > { %593 = vmatpush.msrb.mxu1 %v541_v11  ;;  %639 = vmatpush.msrb.mxu3 %v542_v13  ;;  %v525_v47 = vld [vmem:[#allocation9 + $0x350] sm:$0xff]  ;;  %v526_v49 = vld [vmem:[#allocation9 + $0x358] sm:$0xff]  ;;  %v523_v51 = vld [vmem:[#allocation9 + $0x340] sm:$0xff] }
  0x5b   : > { %571 = vmatpush.msrb.mxu0 %v507_v14  ;;  %617 = vmatpush.msrb.mxu2 %v508_v16  ;;  %v492_v52 = vld [vmem:[#allocation9 + $0x248] sm:$0xff]  ;;  %v489_v54 = vld [vmem:[#allocation9 + $0x230] sm:$0xff]  ;;  %v490_v56 = vld [vmem:[#allocation9 + $0x238] sm:$0xff] }
  0x5c   : > { %594 = vmatpush.msrb.mxu1 %v539_v15  ;;  %640 = vmatpush.msrb.mxu3 %v540_v17  ;;  %v524_v53 = vld [vmem:[#allocation9 + $0x348] sm:$0xff]  ;;  %v521_v55 = vld [vmem:[#allocation9 + $0x330] sm:$0xff]  ;;  %v522_v58 = vld [vmem:[#allocation9 + $0x338] sm:$0xff] }
  0x5d   : > { %572 = vmatpush.msrb.mxu0 %v505_v18  ;;  %618 = vmatpush.msrb.mxu2 %v506_v21  ;;  %v472_v57 = vld [vmem:[#allocation3 + $0x30] sm:$0xfe]  ;;  %v487_v59 = vld [vmem:[#allocation9 + $0x220] sm:$0xff]  ;;  %v488_v62 = vld [vmem:[#allocation9 + $0x228] sm:$0xff] }
  0x5e   : > { %595 = vmatpush.msrb.mxu1 %v537_v20  ;;  %641 = vmatpush.msrb.mxu3 %v538_v23  ;;  %v473_v60 = vld [vmem:[#allocation3] sm:$0xfe]  ;;  %v520_v63 = vld [vmem:[#allocation9 + $0x328] sm:$0xff]  ;;  %v485_v0 = vld [vmem:[#allocation9 + $0x210] sm:$0xff]  ;;  %v554_v1 = vrot.slane %v472_v57, 1 }
  0x5f   : > { %573 = vmatpush.msrb.mxu0 %v503_v24  ;;  %619 = vmatpush.msrb.mxu2 %v504_v26  ;;  %v519_v61 = vld [vmem:[#allocation9 + $0x320] sm:$0xff]  ;;  %v517_v3 = vld [vmem:[#allocation9 + $0x310] sm:$0xff]  ;;  %v486_v4 = vld [vmem:[#allocation9 + $0x218] sm:$0xff] }
  0x60   : > { %596 = vmatpush.msrb.mxu1 %v535_v25  ;;  %642 = vmatpush.msrb.mxu3 %v536_v27  ;;  %v518_v7 = vld [vmem:[#allocation9 + $0x318] sm:$0xff]  ;;  %v515_v9 = vld [vmem:[#allocation9 + $0x300] sm:$0xff]  ;;  %v484_v10 = vld [vmem:[#allocation9 + $0x208] sm:$0xff]  ;;  %v556_v12 = vsel %vm553_vm0, %v554_v1, %v555_v2 }
  0x61   : > { %574 = vmatpush.msrb.mxu0 %v501_v28  ;;  %620 = vmatpush.msrb.mxu2 %v502_v30  ;;  %v516_v11 = vld [vmem:[#allocation9 + $0x308] sm:$0xff]  ;;  %v477_v15 = vld [vmem:[#allocation3 + $0x20] sm:$0x1] }
  0x62   : > { %597 = vmatpush.msrb.mxu1 %v533_v29  ;;  %643 = vmatpush.msrb.mxu3 %v534_v31  ;;  %v476_v14 = vld [vmem:[#allocation3 + $0x8] sm:$0x1]  ;;  %v562_v17 = vrot.slane %v477_v15, 1 }
  0x63   : > { %575 = vmatpush.msrb.mxu0 %v499_v32  ;;  %621 = vmatpush.msrb.mxu2 %v500_v34  ;;  %v560_v16 = vrot.slane %v476_v14, 1 }
  0x64   : > { %598 = vmatpush.msrb.mxu1 %v531_v33  ;;  %644 = vmatpush.msrb.mxu3 %v532_v37 }
  0x65   : > { %388 = vmatmul.f32.vlgmr.msra.gmra.mxu0 %v1278_v5  ;;  %411 = vmatmul.f32.vlgmr.msra.gmra.mxu1 %v1282_v8  ;;  %v561_v18 = vsel %vm553_vm0, %v555_v2, %v560_v16 }
  0x66   : > { %434 = vmatmul.f32.vlgmr.msra.gmra.mxu2 %v1278_v5  ;;  %457 = vmatmul.f32.vlgmr.msra.gmra.mxu3 %v1282_v8  ;;  %v557_v5 = vrot.slane %v473_v60, 1  ;;  %v483_v8 = vld [vmem:[#allocation9 + $0x200] sm:$0xff] }
  0x67   : > { %576 = vmatpush.msrb.mxu0 %v497_v38  ;;  %599 = vmatpush.msrb.mxu1 %v529_v39 }
  0x68   : > { %622 = vmatpush.msrb.mxu2 %v498_v40  ;;  %645 = vmatpush.msrb.mxu3 %v530_v41  ;;  %v559_v13 = vsel %vm553_vm0, %v557_v5, %v558_v6 }
  0x69   : > { %577 = vmatpush.msrb.mxu0 %v495_v42  ;;  %600 = vmatpush.msrb.mxu1 %v527_v43 }
  0x6a   : > { %623 = vmatpush.msrb.mxu2 %v496_v44  ;;  %646 = vmatpush.msrb.mxu3 %v528_v45 }
  0x6b   : > { %578 = vmatpush.msrb.mxu0 %v493_v46  ;;  %601 = vmatpush.msrb.mxu1 %v525_v47 }
  0x6c   : > { %624 = vmatpush.msrb.mxu2 %v494_v48  ;;  %647 = vmatpush.msrb.mxu3 %v526_v49 }
  0x6d   : > { %579 = vmatpush.msrb.mxu0 %v491_v50  ;;  %602 = vmatpush.msrb.mxu1 %v523_v51 }
  0x6e   : > { %625 = vmatpush.msrb.mxu2 %v492_v52  ;;  %648 = vmatpush.msrb.mxu3 %v524_v53 }
  0x6f   : > { %391 = vmatmul.f32.gmra.mxu0 %v1286_v19  ;;  %414 = vmatmul.f32.gmra.mxu1 %v1289_v22 }
  0x70   : > { %437 = vmatmul.f32.gmra.mxu2 %v1286_v19  ;;  %460 = vmatmul.f32.gmra.mxu3 %v1289_v22  ;;  %v563_v19 = vsel %vm553_vm0, %v558_v6, %v562_v17 }
  0x71   : > { %580 = vmatpush.msrb.mxu0 %v489_v54  ;;  %603 = vmatpush.msrb.mxu1 %v521_v55 }
  0x72   : > { %626 = vmatpush.msrb.mxu2 %v490_v56  ;;  %649 = vmatpush.msrb.mxu3 %v522_v58 }
  0x73   : > { %581 = vmatpush.msrb.mxu0 %v487_v59  ;;  %604 = vmatpush.msrb.mxu1 %v519_v61 }
  0x74   : > { %627 = vmatpush.msrb.mxu2 %v488_v62  ;;  %650 = vmatpush.msrb.mxu3 %v520_v63 }
  0x75   : > { %582 = vmatpush.msrb.mxu0 %v485_v0  ;;  %605 = vmatpush.msrb.mxu1 %v517_v3 }
  0x76   : > { %628 = vmatpush.msrb.mxu2 %v486_v4  ;;  %651 = vmatpush.msrb.mxu3 %v518_v7 }
  0x77   : > { %583 = vmatpush.msrb.mxu0 %v483_v8  ;;  %606 = vmatpush.msrb.mxu1 %v515_v9 }
  0x78   : > { %629 = vmatpush.msrb.mxu2 %v484_v10  ;;  %652 = vmatpush.msrb.mxu3 %v516_v11 }
  0x79   : > { %584 = vmatmul.f32.vlgmr.msrb.gmra.mxu0 %v556_v12  ;;  %607 = vmatmul.f32.vlgmr.msrb.gmra.mxu1 %v559_v13 }
  0x7a   : > { %630 = vmatmul.f32.vlgmr.msrb.gmra.mxu2 %v556_v12  ;;  %653 = vmatmul.f32.vlgmr.msrb.gmra.mxu3 %v559_v13 }
  0x81   : > { %587 = vmatmul.f32.gmra.mxu0 %v561_v18  ;;  %610 = vmatmul.f32.gmra.mxu1 %v563_v19 }
  0x82   : > { %633 = vmatmul.f32.gmra.mxu2 %v561_v18  ;;  %656 = vmatmul.f32.gmra.mxu3 %v563_v19 }
  0xe2   : > { %v389_v20 = vpop.f32.mrf.mxu0  ;;  %v412_v21 = vpop.f32.mrf.mxu1 }
  0xe3   : > { %v413_v31 = vadd.f32 %v412_v21, %v389_v20 }
  0xe9   : > { %v435_v22 = vpop.f32.mrf.mxu2  ;;  %v458_v23 = vpop.f32.mrf.mxu3 }
  0xea   : > { %v459_v34 = vadd.f32 %v458_v23, %v435_v22 }
  0xec   : > { %v392_v24 = vpop.f32.mrf.mxu0  ;;  %v415_v25 = vpop.f32.mrf.mxu1 }
  0xed   : > { %v416_v43 = vadd.f32 %v415_v25, %v392_v24 }
  0xf3   : > { %v438_v26 = vpop.f32.mrf.mxu2  ;;  %v461_v27 = vpop.f32.mrf.mxu3 }
  0xf4   : > { %v462_v47 = vadd.f32 %v461_v27, %v438_v26 }
  0xf6   : > { %v585_v28 = vpop.f32.mrf.mxu0  ;;  %v608_v29 = vpop.f32.mrf.mxu1 }
  0xf7   : > { %v609_v30 = vadd.f32 %v608_v29, %v585_v28 }
  0xf9   : > { %v660_v35 = vadd.f32 %v609_v30, %v413_v31 }
  0xfb   : > { %v672_v40 = vmul.f32 %v660_v35, %v660_v35 }
  0xfd   : > { %v631_v32 = vpop.f32.mrf.mxu2  ;;  %v654_v33 = vpop.f32.mrf.mxu3 }
  0xfe   : > { %v655_v36 = vadd.f32 %v654_v33, %v631_v32  ;;  %v588_v37 = vpop.f32.mrf.mxu0  ;;  %v611_v38 = vpop.f32.mrf.mxu1 }
  0xff   : > { %v612_v42 = vadd.f32 %v611_v38, %v588_v37 }
 0x100   : > { %v661_v39 = vadd.f32 %v655_v36, %v459_v34 }
 0x101   : > { %v662_v49 = vadd.f32 %v612_v42, %v416_v43 }
 0x102   : > { %v674_v41 = vmul.f32 %v661_v39, %v661_v39 }
 0x103   : > { %v673_v52 = vmul.f32 %v662_v49, %v662_v49 }
 0x104   : > { %v676_v44 = vadd.f32 %v674_v41, %v672_v40 }
 0x105   : > { %v634_v45 = vpop.f32.mrf.mxu2  ;;  %v657_v46 = vpop.f32.mrf.mxu3 }
 0x106   : > { %v678_v48 = vmax.f32 %v676_v44, 1.4210855e-14  ;;  %v658_v50 = vadd.f32 %v657_v46, %v634_v45 }
 0x108   : > { %937 = vlog2.f32 %v678_v48  ;;  %v663_v51 = vadd.f32 %v658_v50, %v462_v47 }
 0x10a   : > { %v675_v53 = vmul.f32 %v663_v51, %v663_v51 }
 0x10c   : > { %v677_v54 = vadd.f32 %v675_v53, %v673_v52 }
 0x10e   : > { %v938_v55 = vpop.eup %937  ;;  %v679_v56 = vmax.f32 %v677_v54, 1.4210855e-14 }
 0x10f   : > { %v681_v57 = vmul.f32 0.6931472, %v938_v55 }
 0x110   : > { %939 = vlog2.f32 %v679_v56 }
 0x111   : > { %v684_v58 = vmul.f32 0.4342945, %v681_v57 }
 0x113   : > { %v686_v59 = vmul.f32 10.0, %v684_v58 }
 0x115   : > { %688 = vst [vmem:[%s275_s11] sm:$0xff] %v686_v59 }
 0x116   : > { %v940_v60 = vpop.eup %939 }
 0x117   : > { %v683_v61 = vmul.f32 0.6931472, %v940_v60 }
 0x119   : > { %v685_v62 = vmul.f32 0.4342945, %v683_v61 }
 0x11b   : > { %v687_v63 = vmul.f32 10.0, %v685_v62 }
 0x11d   : > { %689 = vst [vmem:[%s275_s11 + $0x8] sm:$0xff] %v687_v63 }
 0x11e   : > { %1058 = shalt.err (!%p1055_p0)
}
 0x11f   : > { %s1126_s28 = smov 128   ;;  %s1127_s29 = smov 8  }
 0x120   : > { %863 = dma.vmem_to_hbm [thread:$0]  (%p1226_p5), %s706_s26, 256, %s708_s27, %s691_s7, %s1126_s28, %s1126_s28, %s1127_s29  }
 0x121 PF: > { %s722_s5 = sand.u32 1, %s1101_s12   ;;  %p877_p3 = pnand %p835_p11, %p1193_p6 }
 0x122   : > { %s723_s0 = scalar_lea.sflag [#allocation6], %s722_s5 }
 0x123   : > { %p878_p7 = pneg %p877_p3 }
 0x125   : > { %1096 = dma.done.wait (%p878_p7), %s723_s0, 256  }
 0x126   : > { %1098 = vsyncadd (%p878_p7), %s723_s0, 4294967040  ;;  %s22_s17 = sadd.s32 1, %s1121_s17   ;;  %s1369_s15 = sld [smem:[#allocation15_spill]] }
 0x127   : > { %p19_p9 = scmp.ge.s32.totalorder %s22_s17, 4   ;;  %s1370_s16 = sld [smem:[#allocation16_spill]] }
 0x128   : > { %s1371_s12 = smov %s1105_s13  ;;  %s1372_s13 = smov %s1109_s14 }
 0x129   : > { %s1373_s14 = smov %s1235_s10  ;;  %21 = sbr.rel (!%p19_p9) target bundleno = 11 (0xb), region = 95 }
 0x12e   :  { %729 = vsyncpa [#allocation5], 1 }
 0x12f   :  { %731 = vsyncpa [#allocation5 + $0x1], 1 }
 0x130   :  { %732 = vsyncpa [#allocation8], 1 }
 0x131   :  { %734 = vsyncpa [#allocation8 + $0x1], 1 }
 0x132   :  { %735 = vsyncpa [#allocation6], 1 }
 0x133   :  { %737 = vsyncpa [#allocation6 + $0x1], 1 }

</bundles_post_ra>
